<compile_context>
chip_gen: v7x
topology: tpu7x:2x2x1
jax: 0.10.0
libtpu: 0.0.40
codegen_flags: <defaults>
</compile_context>

<pallas_src>
import jax
import jax.numpy as jnp
from jax import lax
from jax.experimental import pallas as pl
from jax.experimental.pallas import tpu as pltpu


def escn_kernel(gammas_ref,                          # SMEM (3,): [gamma_channel, gamma_spatial, gamma_global]
                x_ref,                               # (1, C, HW)  lane-dense
                w_sm1_ref, w_sm2_ref,                # shared MLP (Cr, C), (C, Cr)
                t_sp_ref,                            # spatial-conv Toeplitz (2*HW, HW)
                g_w1_ref, g_s1_ref, g_b1_ref,        # global-corr conv1 (Cr, C) + folded BN1 (Cr, 1)
                g_w2_ref, g_s2_ref, g_b2_ref,        # global-corr conv2 (C, Cr) + folded BN2 (C, 1)
                o_ref):                              # (1, C, HW)
    x = x_ref[0].astype(jnp.float32)                 # (C, HW)
    C, HW = x.shape

    # ---------- channel attention: shared MLP on stacked [avg, max] pooled columns ----------
    avg_c = jnp.mean(x, axis=1, keepdims=True)       # (C, 1)
    max_c = jnp.max(x, axis=1, keepdims=True)        # (C, 1)
    pooled = jnp.concatenate([avg_c, max_c], axis=1)                                  # (C, 2)
    hid = jnp.maximum(
        jnp.dot(w_sm1_ref[...], pooled, preferred_element_type=jnp.float32), 0.0)    # (Cr, 2)
    logit = jnp.dot(w_sm2_ref[...], hid, preferred_element_type=jnp.float32)          # (C, 2)
    ch_att = jax.nn.sigmoid(jnp.sum(logit, axis=1, keepdims=True))                    # (C, 1)

    # ---------- spatial attention: channel pooling + 7x7 conv as one Toeplitz MXU matmul ----------
    x_ch = x * ch_att                                                                  # (C, HW)
    avg_sp = jnp.dot(jnp.full((1, C), 1.0 / C, jnp.float32), x_ch,
                     preferred_element_type=jnp.float32)                               # (1, HW)  MXU
    max_sp = jnp.max(x_ch, axis=0, keepdims=True)                                      # (1, HW)
    sp_feat = jnp.concatenate([avg_sp, max_sp], axis=1)                                # (1, 2*HW)
    sp_att = jax.nn.sigmoid(
        jnp.dot(sp_feat, t_sp_ref[...], preferred_element_type=jnp.float32))           # (1, HW)

    # ---------- global correlation: 1x1 conv -> BN -> ReLU -> 1x1 conv -> BN -> sigmoid ----------
    y1 = jnp.dot(g_w1_ref[...], x, preferred_element_type=jnp.float32)                 # (Cr, HW)
    y1 = jnp.maximum(y1 * g_s1_ref[...] + g_b1_ref[...], 0.0)
    y2 = jnp.dot(g_w2_ref[...], y1, preferred_element_type=jnp.float32)                # (C, HW)
    g_att = jax.nn.sigmoid(y2 * g_s2_ref[...] + g_b2_ref[...])                         # (C, HW)

    # ---------- fused gated residual: out = x * total_gate (single elementwise pass) ----------
    gc = gammas_ref[0]
    gs = gammas_ref[1]
    gg = gammas_ref[2]
    gate = (1.0
            + gc * (ch_att - 1.0)
            + gg * (g_att - 1.0)
            + (gs * ch_att) * (sp_att - 1.0))
    o_ref[0] = (x * gate).astype(o_ref.dtype)


def _build_spatial_toeplitz(w_sp, H, W):
    """Fold Conv2d(2, 1, 7, padding=3, bias=False) into a (2*H*W, H*W) matrix T so that
    conv_out_flat = concat([avg_flat, max_flat], lanes) @ T  (row-major pixel order)."""
    K = w_sp.shape[-1]                                              # 7
    pad = K // 2                                                    # 3
    dy = jnp.arange(H)[:, None] - jnp.arange(H)[None, :] + pad      # (H_in, H_out) -> ky
    dx = jnp.arange(W)[:, None] - jnp.arange(W)[None, :] + pad      # (W_in, W_out) -> kx
    vy = (dy >= 0) & (dy < K)
    vx = (dx >= 0) & (dx < K)
    taps = w_sp[:, jnp.clip(dy, 0, K - 1)[:, :, None, None],
                   jnp.clip(dx, 0, K - 1)[None, None, :, :]]         # (2, H_in, H_out, W_in, W_out)
    taps = taps * (vy[:, :, None, None] & vx[None, None, :, :]).astype(w_sp.dtype)
    taps = taps.transpose(0, 1, 3, 2, 4)                             # (2, H_in, W_in, H_out, W_out)
    return taps.reshape(2 * H * W, H * W)


def escn_attention_pallas(x_nchw, p):
    """x_nchw: (N, C, H, W) float32. Returns (N, C, H, W)."""
    N, C, H, W = x_nchw.shape
    HW = H * W
    Cr = p["w_sm1"].shape[0]
    x = x_nchw.reshape(N, C, HW)                      # free trailing-dim collapse (no transpose)
    t_sp = _build_spatial_toeplitz(p["w_sp"], H, W)   # weight-only precompute

    out = pl.pallas_call(
        escn_kernel,
        out_shape=jax.ShapeDtypeStruct((N, C, HW), x.dtype),
        grid_spec=pltpu.PrefetchScalarGridSpec(
            num_scalar_prefetch=0,
            grid=(N,),
            in_specs=[
                pl.BlockSpec(memory_space=pltpu.MemorySpace.SMEM),    # gammas (3,)
                pl.BlockSpec((1, C, HW), lambda n: (n, 0, 0)),        # x, per image
                pl.BlockSpec((Cr, C), lambda n: (0, 0)),              # shared_mlp conv1
                pl.BlockSpec((C, Cr), lambda n: (0, 0)),              # shared_mlp conv2
                pl.BlockSpec((2 * HW, HW), lambda n: (0, 0)),         # spatial-conv Toeplitz
                pl.BlockSpec((Cr, C), lambda n: (0, 0)),              # global_corr conv1
                pl.BlockSpec((Cr, 1), lambda n: (0, 0)),              # BN1 scale (folded)
                pl.BlockSpec((Cr, 1), lambda n: (0, 0)),              # BN1 shift (folded)
                pl.BlockSpec((C, Cr), lambda n: (0, 0)),              # global_corr conv2
                pl.BlockSpec((C, 1), lambda n: (0, 0)),               # BN2 scale (folded)
                pl.BlockSpec((C, 1), lambda n: (0, 0)),               # BN2 shift (folded)
            ],
            out_specs=pl.BlockSpec((1, C, HW), lambda n: (n, 0, 0)),
        ),
        compiler_params=pltpu.CompilerParams(
            dimension_semantics=("parallel",),        # v7x: shard the batch across both TCs
        ),
    )(p["gammas"], x, p["w_sm1"], p["w_sm2"], t_sp,
      p["g_w1"], p["g_s1"], p["g_b1"], p["g_w2"], p["g_s2"], p["g_b2"])

    return out.reshape(N, C, H, W)


def escn_attention_reference(x, p):
    """Pure-JAX reference of the PyTorch forward (NCHW)."""
    N, C, H, W = x.shape
    avg_c = jnp.mean(x, axis=(2, 3))
    max_c = jnp.max(x, axis=(2, 3))

    def mlp(v):                                       # v: (N, C); weights in (out, in) layout
        return jnp.maximum(v @ p["w_sm1"].T, 0.0) @ p["w_sm2"].T

    ch_att = jax.nn.sigmoid(mlp(avg_c) + mlp(max_c))[:, :, None, None]
    x_channel = x * ch_att

    avg_sp = jnp.mean(x_channel, axis=1, keepdims=True)
    max_sp = jnp.max(x_channel, axis=1, keepdims=True)
    sf = jnp.concatenate([avg_sp, max_sp], axis=1)    # (N, 2, H, W)
    conv = lax.conv_general_dilated(sf, p["w_sp"][None], (1, 1), ((3, 3), (3, 3)),
                                    dimension_numbers=("NCHW", "OIHW", "NCHW"))
    sp_att = jax.nn.sigmoid(conv)
    x_spatial = x_channel * sp_att

    x_flat = x.transpose(0, 2, 3, 1).reshape(-1, C)
    s1 = p["g_s1"].reshape(-1); b1 = p["g_b1"].reshape(-1)
    s2 = p["g_s2"].reshape(-1); b2 = p["g_b2"].reshape(-1)
    y1 = jnp.maximum((x_flat @ p["g_w1"].T) * s1 + b1, 0.0)
    g_att = jax.nn.sigmoid((y1 @ p["g_w2"].T) * s2 + b2)
    x_global = x * g_att.reshape(N, H, W, C).transpose(0, 3, 1, 2)

    gc, gs, gg = p["gammas"][0], p["gammas"][1], p["gammas"][2]
    return x + gc * (x_channel - x) + gs * (x_spatial - x_channel) + gg * (x_global - x)


if __name__ == "__main__":
    # Shapes consistent with the module: ESCNAttention(channels=32, reduction_ratio=4)
    N, C, H, W = 2, 32, 16, 16
    r = 4
    Cr = C // r
    eps = 1e-5

    key = jax.random.PRNGKey(0)
    ks = jax.random.split(key, 16)

    x = jax.random.normal(ks[0], (N, C, H, W), jnp.float32)

    # Conv weights in PyTorch (out_ch, in_ch) layout (1x1 kernels squeezed); eval-mode BN folded.
    w_sm1 = jax.random.normal(ks[1], (Cr, C), jnp.float32) * 0.1    # shared_mlp conv1
    w_sm2 = jax.random.normal(ks[2], (C, Cr), jnp.float32) * 0.1    # shared_mlp conv2
    w_sp = jax.random.normal(ks[3], (2, 7, 7), jnp.float32) * 0.1   # conv_spatial (in=2, 7, 7)
    g_w1 = jax.random.normal(ks[4], (Cr, C), jnp.float32) * 0.1     # global_corr conv1
    g_w2 = jax.random.normal(ks[5], (C, Cr), jnp.float32) * 0.1     # global_corr conv2

    bn1_w = jax.random.uniform(ks[6], (Cr,), jnp.float32, 0.5, 1.5)
    bn1_b = jax.random.normal(ks[7], (Cr,), jnp.float32) * 0.1
    bn1_m = jax.random.normal(ks[8], (Cr,), jnp.float32) * 0.1
    bn1_v = jax.random.uniform(ks[9], (Cr,), jnp.float32, 0.5, 1.5)
    bn2_w = jax.random.uniform(ks[10], (C,), jnp.float32, 0.5, 1.5)
    bn2_b = jax.random.normal(ks[11], (C,), jnp.float32) * 0.1
    bn2_m = jax.random.normal(ks[12], (C,), jnp.float32) * 0.1
    bn2_v = jax.random.uniform(ks[13], (C,), jnp.float32, 0.5, 1.5)

    g_s1 = (bn1_w / jnp.sqrt(bn1_v + eps)).reshape(Cr, 1)
    g_b1 = (bn1_b - bn1_m * bn1_w / jnp.sqrt(bn1_v + eps)).reshape(Cr, 1)
    g_s2 = (bn2_w / jnp.sqrt(bn2_v + eps)).reshape(C, 1)
    g_b2 = (bn2_b - bn2_m * bn2_w / jnp.sqrt(bn2_v + eps)).reshape(C, 1)

    # Module inits gammas to zero (output == identity); nonzero here so all branches are tested.
    gammas = jnp.array([0.3, 0.5, 0.7], jnp.float32)

    params = dict(w_sm1=w_sm1, w_sm2=w_sm2, w_sp=w_sp,
                  g_w1=g_w1, g_s1=g_s1, g_b1=g_b1,
                  g_w2=g_w2, g_s2=g_s2, g_b2=g_b2,
                  gammas=gammas)

    out = jax.jit(escn_attention_pallas)(x, params)
    out = jax.block_until_ready(out)

    ref = jax.block_until_ready(escn_attention_reference(x, params))
    assert out.shape == (N, C, H, W)
    assert jnp.allclose(out, ref, atol=5e-3, rtol=5e-3), float(jnp.max(jnp.abs(out - ref)))

    print("KERNEL_OK")
</pallas_src>

<mosaic_0001>
module attributes {stable_mosaic.version = 11 : i64} {
  func.func @escn_kernel(%arg0: i32, %arg1: memref<3xf32, #tpu.memory_space<smem>>, %arg2: memref<1x32x256xf32, #tpu.memory_space<vmem>>, %arg3: memref<8x32xf32, #tpu.memory_space<vmem>>, %arg4: memref<32x8xf32, #tpu.memory_space<vmem>>, %arg5: memref<512x256xf32, #tpu.memory_space<vmem>>, %arg6: memref<8x32xf32, #tpu.memory_space<vmem>>, %arg7: memref<8x1xf32, #tpu.memory_space<vmem>>, %arg8: memref<8x1xf32, #tpu.memory_space<vmem>>, %arg9: memref<32x8xf32, #tpu.memory_space<vmem>>, %arg10: memref<32x1xf32, #tpu.memory_space<vmem>>, %arg11: memref<32x1xf32, #tpu.memory_space<vmem>>, %arg12: memref<1x32x256xf32, #tpu.memory_space<vmem>>) attributes {dimension_semantics = [#tpu.dimension_semantics<parallel>], iteration_bounds = array<i64: 2>, scalar_prefetch = 0 : i64, scratch_operands = 0 : i64, tpu.core_type = #tpu.core_type<tc>, window_params = [{transform_indices = @transform_0, window_bounds = array<i64: 3>}, {transform_indices = @transform_1, window_bounds = array<i64: 1, 32, 256>}, {pipeline_mode = #tpu.pipeline_mode<synchronous>, transform_indices = @transform_2, window_bounds = array<i64: 8, 32>}, {pipeline_mode = #tpu.pipeline_mode<synchronous>, transform_indices = @transform_3, window_bounds = array<i64: 32, 8>}, {pipeline_mode = #tpu.pipeline_mode<synchronous>, transform_indices = @transform_4, window_bounds = array<i64: 512, 256>}, {pipeline_mode = #tpu.pipeline_mode<synchronous>, transform_indices = @transform_5, window_bounds = array<i64: 8, 32>}, {pipeline_mode = #tpu.pipeline_mode<synchronous>, transform_indices = @transform_6, window_bounds = array<i64: 8, 1>}, {pipeline_mode = #tpu.pipeline_mode<synchronous>, transform_indices = @transform_7, window_bounds = array<i64: 8, 1>}, {pipeline_mode = #tpu.pipeline_mode<synchronous>, transform_indices = @transform_8, window_bounds = array<i64: 32, 8>}, {pipeline_mode = #tpu.pipeline_mode<synchronous>, transform_indices = @transform_9, window_bounds = array<i64: 32, 1>}, {pipeline_mode = #tpu.pipeline_mode<synchronous>, transform_indices = @transform_10, window_bounds = array<i64: 32, 1>}, {transform_indices = @transform_11, window_bounds = array<i64: 1, 32, 256>}]} {
    %c0 = arith.constant 0 : index
    %c0_0 = arith.constant 0 : index
    %c0_1 = arith.constant 0 : index
    %0 = vector.load %arg2[%c0, %c0_0, %c0_1] : memref<1x32x256xf32, #tpu.memory_space<vmem>>, vector<1x32x256xf32>
    %1 = vector.shape_cast %0 : vector<1x32x256xf32> to vector<32x256xf32>
    %cst = arith.constant dense<0.000000e+00> : vector<32xf32>
    %2 = vector.multi_reduction <add>, %1, %cst [1] : vector<32x256xf32> to vector<32xf32>
    %3 = vector.shape_cast %2 : vector<32xf32> to vector<32x1xf32>
    %cst_2 = arith.constant 2.560000e+02 : f32
    %4 = vector.broadcast %cst_2 : f32 to vector<32x1xf32>
    %5 = arith.divf %3, %4 : vector<32x1xf32>
    %cst_3 = arith.constant dense<0xFF800000> : vector<32xf32>
    %6 = vector.multi_reduction <maximumf>, %1, %cst_3 [1] : vector<32x256xf32> to vector<32xf32>
    %7 = vector.shape_cast %6 : vector<32xf32> to vector<32x1xf32>
    %8 = tpu.concatenate %5, %7 in 1 : vector<32x1xf32>, vector<32x1xf32> -> vector<32x2xf32>
    %c0_4 = arith.constant 0 : index
    %c0_5 = arith.constant 0 : index
    %9 = vector.load %arg3[%c0_4, %c0_5] : memref<8x32xf32, #tpu.memory_space<vmem>>, vector<8x32xf32>
    %cst_6 = arith.constant dense<0.000000e+00> : vector<8x2xf32>
    %10 = tpu.matmul %9, %8, %cst_6 {dimension_numbers = #tpu.dot_dimension_numbers<[1], [0], [0], [1], [0, 0, 1, 1], [], []>} : vector<8x32xf32>, vector<32x2xf32>, vector<8x2xf32> -> vector<8x2xf32>
    %cst_7 = arith.constant 0.000000e+00 : f32
    %11 = vector.broadcast %cst_7 : f32 to vector<8x2xf32>
    %12 = arith.maximumf %10, %11 : vector<8x2xf32>
    %c0_8 = arith.constant 0 : index
    %c0_9 = arith.constant 0 : index
    %13 = vector.load %arg4[%c0_8, %c0_9] : memref<32x8xf32, #tpu.memory_space<vmem>>, vector<32x8xf32>
    %cst_10 = arith.constant dense<0.000000e+00> : vector<32x2xf32>
    %14 = tpu.matmul %13, %12, %cst_10 {dimension_numbers = #tpu.dot_dimension_numbers<[1], [0], [0], [1], [0, 0, 1, 1], [], []>} : vector<32x8xf32>, vector<8x2xf32>, vector<32x2xf32> -> vector<32x2xf32>
    %cst_11 = arith.constant dense<0.000000e+00> : vector<32xf32>
    %15 = vector.multi_reduction <add>, %14, %cst_11 [1] : vector<32x2xf32> to vector<32xf32>
    %16 = vector.shape_cast %15 : vector<32xf32> to vector<32x1xf32>
    %17 = arith.negf %16 : vector<32x1xf32>
    %18 = math.exp %17 : vector<32x1xf32>
    %cst_12 = arith.constant 1.000000e+00 : f32
    %19 = vector.broadcast %cst_12 : f32 to vector<32x1xf32>
    %20 = arith.addf %19, %18 : vector<32x1xf32>
    %21 = arith.divf %19, %20 : vector<32x1xf32>
    %22 = vector.broadcast %21 : vector<32x1xf32> to vector<32x256xf32>
    %23 = arith.mulf %1, %22 : vector<32x256xf32>
    %cst_13 = arith.constant 3.125000e-02 : f32
    %24 = vector.broadcast %cst_13 : f32 to vector<1x32xf32>
    %cst_14 = arith.constant dense<0.000000e+00> : vector<1x256xf32>
    %25 = tpu.matmul %24, %23, %cst_14 {dimension_numbers = #tpu.dot_dimension_numbers<[1], [0], [0], [1], [0, 0, 1, 1], [], []>} : vector<1x32xf32>, vector<32x256xf32>, vector<1x256xf32> -> vector<1x256xf32>
    %cst_15 = arith.constant dense<0xFF800000> : vector<256xf32>
    %26 = vector.multi_reduction <maximumf>, %23, %cst_15 [0] : vector<32x256xf32> to vector<256xf32>
    %27 = vector.shape_cast %26 : vector<256xf32> to vector<1x256xf32>
    %28 = tpu.concatenate %25, %27 in 1 : vector<1x256xf32>, vector<1x256xf32> -> vector<1x512xf32>
    %c0_16 = arith.constant 0 : index
    %c0_17 = arith.constant 0 : index
    %29 = vector.load %arg5[%c0_16, %c0_17] : memref<512x256xf32, #tpu.memory_space<vmem>>, vector<512x256xf32>
    %cst_18 = arith.constant dense<0.000000e+00> : vector<1x256xf32>
    %30 = tpu.matmul %28, %29, %cst_18 {dimension_numbers = #tpu.dot_dimension_numbers<[1], [0], [0], [1], [0, 0, 1, 1], [], []>} : vector<1x512xf32>, vector<512x256xf32>, vector<1x256xf32> -> vector<1x256xf32>
    %31 = arith.negf %30 : vector<1x256xf32>
    %32 = math.exp %31 : vector<1x256xf32>
    %cst_19 = arith.constant 1.000000e+00 : f32
    %33 = vector.broadcast %cst_19 : f32 to vector<1x256xf32>
    %34 = arith.addf %33, %32 : vector<1x256xf32>
    %35 = arith.divf %33, %34 : vector<1x256xf32>
    %c0_20 = arith.constant 0 : index
    %c0_21 = arith.constant 0 : index
    %36 = vector.load %arg6[%c0_20, %c0_21] : memref<8x32xf32, #tpu.memory_space<vmem>>, vector<8x32xf32>
    %cst_22 = arith.constant dense<0.000000e+00> : vector<8x256xf32>
    %37 = tpu.matmul %36, %1, %cst_22 {dimension_numbers = #tpu.dot_dimension_numbers<[1], [0], [0], [1], [0, 0, 1, 1], [], []>} : vector<8x32xf32>, vector<32x256xf32>, vector<8x256xf32> -> vector<8x256xf32>
    %c0_23 = arith.constant 0 : index
    %c0_24 = arith.constant 0 : index
    %38 = vector.load %arg7[%c0_23, %c0_24] : memref<8x1xf32, #tpu.memory_space<vmem>>, vector<8x1xf32>
    %39 = vector.broadcast %38 : vector<8x1xf32> to vector<8x256xf32>
    %40 = arith.mulf %37, %39 : vector<8x256xf32>
    %c0_25 = arith.constant 0 : index
    %c0_26 = arith.constant 0 : index
    %41 = vector.load %arg8[%c0_25, %c0_26] : memref<8x1xf32, #tpu.memory_space<vmem>>, vector<8x1xf32>
    %42 = vector.broadcast %41 : vector<8x1xf32> to vector<8x256xf32>
    %43 = arith.addf %40, %42 : vector<8x256xf32>
    %cst_27 = arith.constant 0.000000e+00 : f32
    %44 = vector.broadcast %cst_27 : f32 to vector<8x256xf32>
    %45 = arith.maximumf %43, %44 : vector<8x256xf32>
    %c0_28 = arith.constant 0 : index
    %c0_29 = arith.constant 0 : index
    %46 = vector.load %arg9[%c0_28, %c0_29] : memref<32x8xf32, #tpu.memory_space<vmem>>, vector<32x8xf32>
    %cst_30 = arith.constant dense<0.000000e+00> : vector<32x256xf32>
    %47 = tpu.matmul %46, %45, %cst_30 {dimension_numbers = #tpu.dot_dimension_numbers<[1], [0], [0], [1], [0, 0, 1, 1], [], []>} : vector<32x8xf32>, vector<8x256xf32>, vector<32x256xf32> -> vector<32x256xf32>
    %c0_31 = arith.constant 0 : index
    %c0_32 = arith.constant 0 : index
    %48 = vector.load %arg10[%c0_31, %c0_32] : memref<32x1xf32, #tpu.memory_space<vmem>>, vector<32x1xf32>
    %49 = vector.broadcast %48 : vector<32x1xf32> to vector<32x256xf32>
    %50 = arith.mulf %47, %49 : vector<32x256xf32>
    %c0_33 = arith.constant 0 : index
    %c0_34 = arith.constant 0 : index
    %51 = vector.load %arg11[%c0_33, %c0_34] : memref<32x1xf32, #tpu.memory_space<vmem>>, vector<32x1xf32>
    %52 = vector.broadcast %51 : vector<32x1xf32> to vector<32x256xf32>
    %53 = arith.addf %50, %52 : vector<32x256xf32>
    %54 = arith.negf %53 : vector<32x256xf32>
    %55 = math.exp %54 : vector<32x256xf32>
    %cst_35 = arith.constant 1.000000e+00 : f32
    %56 = vector.broadcast %cst_35 : f32 to vector<32x256xf32>
    %57 = arith.addf %56, %55 : vector<32x256xf32>
    %58 = arith.divf %56, %57 : vector<32x256xf32>
    %c0_36 = arith.constant 0 : index
    %59 = memref.load %arg1[%c0_36] : memref<3xf32, #tpu.memory_space<smem>>
    %c1 = arith.constant 1 : index
    %60 = memref.load %arg1[%c1] : memref<3xf32, #tpu.memory_space<smem>>
    %c2 = arith.constant 2 : index
    %61 = memref.load %arg1[%c2] : memref<3xf32, #tpu.memory_space<smem>>
    %cst_37 = arith.constant 1.000000e+00 : f32
    %62 = vector.broadcast %cst_37 : f32 to vector<32x1xf32>
    %63 = arith.subf %21, %62 : vector<32x1xf32>
    %64 = vector.broadcast %59 : f32 to vector<32x1xf32>
    %65 = arith.mulf %64, %63 : vector<32x1xf32>
    %cst_38 = arith.constant 1.000000e+00 : f32
    %66 = vector.broadcast %cst_38 : f32 to vector<32x1xf32>
    %67 = arith.addf %66, %65 : vector<32x1xf32>
    %cst_39 = arith.constant 1.000000e+00 : f32
    %68 = vector.broadcast %cst_39 : f32 to vector<32x256xf32>
    %69 = arith.subf %58, %68 : vector<32x256xf32>
    %70 = vector.broadcast %61 : f32 to vector<32x256xf32>
    %71 = arith.mulf %70, %69 : vector<32x256xf32>
    %72 = vector.broadcast %67 : vector<32x1xf32> to vector<32x256xf32>
    %73 = arith.addf %72, %71 : vector<32x256xf32>
    %74 = vector.broadcast %60 : f32 to vector<32x1xf32>
    %75 = arith.mulf %74, %21 : vector<32x1xf32>
    %cst_40 = arith.constant 1.000000e+00 : f32
    %76 = vector.broadcast %cst_40 : f32 to vector<1x256xf32>
    %77 = arith.subf %35, %76 : vector<1x256xf32>
    %78 = vector.broadcast %75 : vector<32x1xf32> to vector<32x256xf32>
    %79 = vector.broadcast %77 : vector<1x256xf32> to vector<32x256xf32>
    %80 = arith.mulf %78, %79 : vector<32x256xf32>
    %81 = arith.addf %73, %80 : vector<32x256xf32>
    %82 = arith.mulf %1, %81 : vector<32x256xf32>
    %c0_41 = arith.constant 0 : index
    %c0_42 = arith.constant 0 : index
    %c0_43 = arith.constant 0 : index
    %83 = vector.load %arg12[%c0_41, %c0_42, %c0_43] : memref<1x32x256xf32, #tpu.memory_space<vmem>>, vector<1x32x256xf32>
    %84 = vector.shape_cast %83 : vector<1x32x256xf32> to vector<32x256xf32>
    %85 = vector.shape_cast %82 : vector<32x256xf32> to vector<1x32x256xf32>
    tpu.vector_store %arg12[%c0_41, %c0_42, %c0_43], %85 {strides = array<i32>} : memref<1x32x256xf32, #tpu.memory_space<vmem>>, vector<1x32x256xf32>,
    return
  }
  func.func @transform_0(%arg0: i32) -> i32 {
    %c0_i32 = arith.constant 0 : i32
    %c0_i32_0 = arith.constant 0 : i32
    return %c0_i32 : i32
  }
  func.func @transform_1(%arg0: i32) -> (i32, i32, i32) {
    %c0_i32 = arith.constant 0 : i32
    %c0_i32_0 = arith.constant 0 : i32
    %c0_i32_1 = arith.constant 0 : i32
    return %arg0, %c0_i32, %c0_i32_0 : i32, i32, i32
  }
  func.func @transform_2(%arg0: i32) -> (i32, i32) {
    %c0_i32 = arith.constant 0 : i32
    %c0_i32_0 = arith.constant 0 : i32
    %c0_i32_1 = arith.constant 0 : i32
    return %c0_i32, %c0_i32_0 : i32, i32
  }
  func.func @transform_3(%arg0: i32) -> (i32, i32) {
    %c0_i32 = arith.constant 0 : i32
    %c0_i32_0 = arith.constant 0 : i32
    %c0_i32_1 = arith.constant 0 : i32
    return %c0_i32, %c0_i32_0 : i32, i32
  }
  func.func @transform_4(%arg0: i32) -> (i32, i32) {
    %c0_i32 = arith.constant 0 : i32
    %c0_i32_0 = arith.constant 0 : i32
    %c0_i32_1 = arith.constant 0 : i32
    return %c0_i32, %c0_i32_0 : i32, i32
  }
  func.func @transform_5(%arg0: i32) -> (i32, i32) {
    %c0_i32 = arith.constant 0 : i32
    %c0_i32_0 = arith.constant 0 : i32
    %c0_i32_1 = arith.constant 0 : i32
    return %c0_i32, %c0_i32_0 : i32, i32
  }
  func.func @transform_6(%arg0: i32) -> (i32, i32) {
    %c0_i32 = arith.constant 0 : i32
    %c0_i32_0 = arith.constant 0 : i32
    %c0_i32_1 = arith.constant 0 : i32
    return %c0_i32, %c0_i32_0 : i32, i32
  }
  func.func @transform_7(%arg0: i32) -> (i32, i32) {
    %c0_i32 = arith.constant 0 : i32
    %c0_i32_0 = arith.constant 0 : i32
    %c0_i32_1 = arith.constant 0 : i32
    return %c0_i32, %c0_i32_0 : i32, i32
  }
  func.func @transform_8(%arg0: i32) -> (i32, i32) {
    %c0_i32 = arith.constant 0 : i32
    %c0_i32_0 = arith.constant 0 : i32
    %c0_i32_1 = arith.constant 0 : i32
    return %c0_i32, %c0_i32_0 : i32, i32
  }
  func.func @transform_9(%arg0: i32) -> (i32, i32) {
    %c0_i32 = arith.constant 0 : i32
    %c0_i32_0 = arith.constant 0 : i32
    %c0_i32_1 = arith.constant 0 : i32
    return %c0_i32, %c0_i32_0 : i32, i32
  }
  func.func @transform_10(%arg0: i32) -> (i32, i32) {
    %c0_i32 = arith.constant 0 : i32
    %c0_i32_0 = arith.constant 0 : i32
    %c0_i32_1 = arith.constant 0 : i32
    return %c0_i32, %c0_i32_0 : i32, i32
  }
  func.func @transform_11(%arg0: i32) -> (i32, i32, i32) {
    %c0_i32 = arith.constant 0 : i32
    %c0_i32_0 = arith.constant 0 : i32
    %c0_i32_1 = arith.constant 0 : i32
    return %arg0, %c0_i32, %c0_i32_0 : i32, i32, i32
  }
}

</mosaic_0001>

<bundles_post_ra>
// kernel: escn_attention_pallas.1
= control target key start
LH: loop header
LB: loop body
LE: loop exit
PB: predicated region body
PF: predicated region fallthrough
CT: control target
= control target key end

     0   :  { %16 = vsyncpa [#allocation3], 0  ;;  %s1927_s17 = smov 0   ;;  %s2551_s0 = inlined_call_operand.vmem [shape: f32[3], index: 0, kind: input, shape index: {}]   ;;  %s2552_s1 = inlined_call_operand.vmem [shape: f32[2,32,256], index: 1, kind: input, shape index: {}]   ;;  %s2553_s2 = inlined_call_operand.vmem [shape: f32[8,32], index: 2, kind: input, shape index: {}]   ;;  %s2554_s3 = inlined_call_operand.vmem [shape: f32[32,8], index: 3, kind: input, shape index: {}]   ;;  %s2555_s4 = inlined_call_operand.vmem [shape: f32[512,256], index: 4, kind: input, shape index: {}]   ;;  %s2556_s5 = inlined_call_operand.vmem [shape: f32[8,32], index: 5, kind: input, shape index: {}]   ;;  %s2557_s6 = inlined_call_operand.vmem [shape: f32[8,1], index: 6, kind: input, shape index: {}]   ;;  %s2558_s7 = inlined_call_operand.vmem [shape: f32[8,1], index: 7, kind: input, shape index: {}]   ;;  %s2559_s8 = inlined_call_operand.vmem [shape: f32[32,8], index: 8, kind: input, shape index: {}]   ;;  %s2560_s9 = inlined_call_operand.vmem [shape: f32[32,1], index: 9, kind: input, shape index: {}]   ;;  %s2561_s10 = inlined_call_operand.vmem [shape: f32[32,1], index: 10, kind: input, shape index: {}]   ;;  %s2562_s11 = inlined_call_operand.vmem [shape: f32[2,32,256], index: 11, kind: output, shape index: {}]  }
   0x1 LB: > { %s1505_s18 = sadd.s32 4294967295, %s1859_s17   ;;  %p1507_p0 = scmp.ge.s32.totalorder %s1859_s17, 1  ;;  %s1859_s17 = sphi %s1927_s17, %s22_s17  }
   0x2   : > { %p289_p1 = scmp.lt.s32.totalorder %s1859_s17, 3  ;;  %s302_s21 = sshll.u32 %s2551_s0, 4  ;;  %s303_s21 = int_to_ptr.vmem [resolvable:$true] %s302_s21 }
   0x3   : > { %p1752_p3 = scmp.eq.s32.totalorder %s1505_s18, 0  ;;  %s1834_s23 = scalar_lea.vmem %s303_s21, 16 }
   0x4   : > { %p1938_p2 = pnand %p1507_p0, %p289_p1  ;;  %p1835_p6 = scmp.ne.s32.totalorder %s303_s21, %s1834_s23 }
   0x5   : > { %p1842_p10 = scmp.lt.s32.totalorder %s303_s21, %s303_s21  ;;  %p1843_p11 = scmp.lt.s32.totalorder %s1834_s23, %s1834_s23 }
   0x6   : > { %p1748_p4 = pneg %p1938_p2 }
   0x7   : > { %p1844_p12 = por %p1843_p11, %p1842_p10 }
   0x8   : > { %p1749_p5 = pnand %p1752_p3, %p1748_p4 }
   0xa   : > { %p1836_p7 = pneg %p1749_p5 }
   0xc   : > { %p1837_p8 = pnand %p1836_p7, %p1835_p6 }
   0xe   : > { %p1838_p9 = pneg %p1837_p8 }
  0x10   : > { %p1845_p13 = pnand %p1844_p12, %p1838_p9 }
  0x12   : > { %1848 = shalt.err (!%p1845_p13)
}
  0x13   : > { %s1861_s24 = smov [#allocation2]   ;;  %350 = sbr.rel (%p1938_p2) target bundleno = 1512 (0x5e8), region = 64 }
  0x14   : > { %1751 = dma.vmem_to_smem (!%p1749_p5), %s303_s21, 16, %s1861_s24, [#allocation3]  }
  0x1a   : > { %1854 = dma.done.wait (%p1752_p3), [#allocation3], 16  }
  0x1b   : > { %1856 = vsyncadd (%p1752_p3), [#allocation3], 4294967280 }
  0x1c   : > { %356 = sfence }
  0x1d   : > { %p391_p0 = scmp.lt.s32.totalorder %s1505_s18, 1  ;;  %v1862_v16 = vmov 0.0|0.0   ;;  %vm1863_vm0 = vmmov 0   ;;  %v1864_v17 = vmov 0.0   ;;  %vm438_vm1 = vcmask 7168   ;;  %v443_v36 = vld [vmem:[%s2553_s2] sm:$0xff] }
  0x1e   : > { %1590 = vmatprep.subr.bf16.mxu0 %v1862_v16  ;;  %1579 = vmatprep.mubr.msk.f32.mxu0 %vm1863_vm0, %v1864_v17  ;;  %vm444_vm2 = vcmask 261120   ;;  %v519_v37 = vld [vmem:[%s2554_s3] sm:$0xff]  ;;  %vm523_vm3 = vcmask 64512   ;;  %v520_v41 = vld [vmem:[%s2554_s3 + $0x8] sm:$0xff]  ;;  %v521_v42 = vld [vmem:[%s2554_s3 + $0x10] sm:$0xff]  ;;  %vm621_vm4 = vcmask 15360  }
  0x1f   : > { %s2565_s18 = smov (!%p391_p0, %s1505_s18), 1  ;;  %1584 = vmatprep.mubr.msk.f32.mxu1 %vm523_vm3, %v519_v37  ;;  %v522_v43 = vld [vmem:[%s2554_s3 + $0x18] sm:$0xff]  ;;  %v823_v44 = vld [vmem:[%s2555_s4 + $0x208] sm:$0xff]  ;;  %v822_v46 = vld [vmem:[%s2555_s4 + $0x200] sm:$0xff]  ;;  %s1541_s21 = sld [smem:[#allocation2 + $0x1]] }
  0x20   : > { %s1559_s25 = sshll.u32 %s2565_s18, 6  ;;  %v825_v45 = vld [vmem:[%s2555_s4 + $0x218] sm:$0xff]  ;;  %v824_v48 = vld [vmem:[%s2555_s4 + $0x210] sm:$0xff]  ;;  %v827_v49 = vld [vmem:[%s2555_s4 + $0x228] sm:$0xff]  ;;  %s1350_s24 = sld [smem:[#allocation2]] }
  0x21   : > { %s1957_s28 = scalar_lea.vmem %s2552_s1, %s1559_s25  ;;  %v1668_v47 = vpack.c.bf16 %v825_v45, %v823_v44  ;;  %v829_v50 = vld [vmem:[%s2555_s4 + $0x238] sm:$0xff]  ;;  %v1670_v51 = vpack.c.bf16 %v824_v48, %v822_v46  ;;  %v826_v53 = vld [vmem:[%s2555_s4 + $0x220] sm:$0xff]  ;;  %v828_v54 = vld [vmem:[%s2555_s4 + $0x230] sm:$0xff]  ;;  %s1542_s26 = sld [smem:[#allocation2 + $0x2]] }
  0x22   : > { %v1960_v0 = vld [vmem:[%s1957_s28] sm:$0xff]  ;;  %v1963_v1 = vld [vmem:[%s1957_s28 + $0x8] sm:$0xff]  ;;  %v1966_v2 = vld [vmem:[%s1957_s28 + $0x10] sm:$0xff]  ;;  %v1672_v52 = vpack.c.bf16 %v829_v50, %v827_v49  ;;  %v1674_v57 = vpack.c.bf16 %v828_v54, %v826_v53  ;;  %s2523_s30 = scalar_lea.vmem %s2562_s11, %s1559_s25 }
  0x23   : > { %v426_v3 = vmax.f32 %v1960_v0, %v1963_v1  ;;  %v409_v4 = vadd.f32 %v1963_v1, %v1960_v0  ;;  %v1973_v5 = vld [vmem:[%s1957_s28 + $0x18] sm:$0xff]  ;;  %v1980_v8 = vld [vmem:[%s1957_s28 + $0x30] sm:$0xff]  ;;  %v1986_v10 = vld [vmem:[%s1957_s28 + $0x20] sm:$0xff] }
  0x24   : > { %v429_v6 = vmax.f32 %v1966_v2, %v1973_v5  ;;  %v412_v7 = vadd.f32 %v1973_v5, %v1966_v2  ;;  %v1983_v9 = vld [vmem:[%s1957_s28 + $0x38] sm:$0xff]  ;;  %v1989_v11 = vld [vmem:[%s1957_s28 + $0x28] sm:$0xff]  ;;  %v830_v59 = vld [vmem:[%s2555_s4 + $0x240] sm:$0xff] }
  0x25   : > { %427 = vmax.xlane.f32.xlu1 %v426_v3  ;;  %410 = vadd.xlane.f32.xlu0 %v409_v4  ;;  %v418_v12 = vadd.f32 %v1983_v9, %v1980_v8  ;;  %v415_v13 = vadd.f32 %v1989_v11, %v1986_v10  ;;  %v435_v14 = vmax.f32 %v1980_v8, %v1983_v9  ;;  %v831_v55 = vld [vmem:[%s2555_s4 + $0x248] sm:$0xff]  ;;  %v833_v56 = vld [vmem:[%s2555_s4 + $0x258] sm:$0xff]  ;;  %v832_v60 = vld [vmem:[%s2555_s4 + $0x250] sm:$0xff] }
  0x26   : > { %v432_v15 = vmax.f32 %v1986_v10, %v1989_v11  ;;  %v1676_v58 = vpack.c.bf16 %v833_v56, %v831_v55  ;;  %v835_v61 = vld [vmem:[%s2555_s4 + $0x268] sm:$0xff]  ;;  %v837_v62 = vld [vmem:[%s2555_s4 + $0x278] sm:$0xff]  ;;  %v1678_v63 = vpack.c.bf16 %v832_v60, %v830_v59  ;;  %v834_v4 = vld [vmem:[%s2555_s4 + $0x260] sm:$0xff] }
  0x27   : > { %v1680_v3 = vpack.c.bf16 %v837_v62, %v835_v61  ;;  %v848_v37 = vld [vmem:[%s2555_s4 + $0x2d0] sm:$0xff]  ;;  %v855_v45 = vld [vmem:[%s2555_s4 + $0x308] sm:$0xff]  ;;  %v857_v46 = vld [vmem:[%s2555_s4 + $0x318] sm:$0xff] }
  0x28   : > { %v854_v48 = vld [vmem:[%s2555_s4 + $0x300] sm:$0xff]  ;;  %v856_v49 = vld [vmem:[%s2555_s4 + $0x310] sm:$0xff]  ;;  %v863_v56 = vld [vmem:[%s2555_s4 + $0x348] sm:$0xff] }
  0x29   : > { %430 = vmax.xlane.f32.xlu1 %v429_v6  ;;  %413 = vadd.xlane.f32.xlu0 %v412_v7  ;;  %v836_v6 = vld [vmem:[%s2555_s4 + $0x270] sm:$0xff]  ;;  %v1702_v50 = vpack.c.bf16 %v856_v49, %v854_v48  ;;  %v858_v54 = vld [vmem:[%s2555_s4 + $0x320] sm:$0xff]  ;;  %v867_v62 = vld [vmem:[%s2555_s4 + $0x368] sm:$0xff] }
  0x2a   : > { %v1682_v7 = vpack.c.bf16 %v836_v6, %v834_v4  ;;  %v860_v55 = vld [vmem:[%s2555_s4 + $0x330] sm:$0xff]  ;;  %v862_v59 = vld [vmem:[%s2555_s4 + $0x340] sm:$0xff] }
  0x2b   : > { %v864_v60 = vld [vmem:[%s2555_s4 + $0x350] sm:$0xff]  ;;  %v866_v6 = vld [vmem:[%s2555_s4 + $0x360] sm:$0xff] }
  0x2d   : > { %419 = vadd.xlane.f32.xlu1 %v418_v12  ;;  %416 = vadd.xlane.f32.xlu0 %v415_v13 }
  0x31   : > { %436 = vmax.xlane.f32.xlu1 %v435_v14  ;;  %433 = vmax.xlane.f32.xlu0 %v432_v15 }
  0xb2   : > { %v428_v18 = vpop.xlane.xlu1 %427  ;;  %v411_v19 = vpop.xlane.xlu0 %410 }
  0xb3   : > { %v422_v20 = vmul.f32 0.00390625, %v411_v19 }
  0xb5   : > { %v439_v24 = vsel %vm438_vm1, %v422_v20, %v428_v18 }
  0xb6   : > { %v431_v21 = vpop.xlane.xlu1 %430  ;;  %v414_v22 = vpop.xlane.xlu0 %413 }
  0xb7   : > { %v423_v23 = vmul.f32 0.00390625, %v414_v22  ;;  %v841_v22 = vld [vmem:[%s2555_s4 + $0x298] sm:$0xff] }
  0xb9   : > { %v440_v25 = vsel %vm438_vm1, %v423_v23, %v431_v21  ;;  %v839_v21 = vld [vmem:[%s2555_s4 + $0x288] sm:$0xff] }
  0xba   : > { %v420_v26 = vpop.xlane.xlu1 %419  ;;  %v417_v27 = vpop.xlane.xlu0 %416  ;;  %v1591_v28 = vpack.c.bf16 %v440_v25, %v439_v24  ;;  %v1684_v23 = vpack.c.bf16 %v841_v22, %v839_v21  ;;  %v838_v24 = vld [vmem:[%s2555_s4 + $0x280] sm:$0xff]  ;;  %v840_v25 = vld [vmem:[%s2555_s4 + $0x290] sm:$0xff]  ;;  %v877_v21 = vld [vmem:[%s2555_s4 + $0x3b8] sm:$0xff] }
  0xbb   : > { %v425_v29 = vmul.f32 0.00390625, %v420_v26  ;;  %v424_v30 = vmul.f32 0.00390625, %v417_v27  ;;  %v1686_v26 = vpack.c.bf16 %v840_v25, %v838_v24  ;;  %v843_v27 = vld [vmem:[%s2555_s4 + $0x2a8] sm:$0xff]  ;;  %v876_v24 = vld [vmem:[%s2555_s4 + $0x3b0] sm:$0xff] }
  0xbc   : > { %1592 = vmatpush3.bf16.msra.mxu0 %v1591_v28  ;;  %v845_v28 = vld [vmem:[%s2555_s4 + $0x2b8] sm:$0xff] }
  0xbd   : > { %1593 = vmatprep.subr.bf16.mxu0 %v1862_v16 }
  0xbe   : > { %v437_v31 = vpop.xlane.xlu1 %436  ;;  %v434_v32 = vpop.xlane.xlu0 %433 }
  0xbf   : > { %v442_v33 = vsel %vm438_vm1, %v425_v29, %v437_v31  ;;  %v441_v34 = vsel %vm438_vm1, %v424_v30, %v434_v32  ;;  %v1688_v29 = vpack.c.bf16 %v845_v28, %v843_v27  ;;  %v842_v30 = vld [vmem:[%s2555_s4 + $0x2a0] sm:$0xff]  ;;  %v844_v31 = vld [vmem:[%s2555_s4 + $0x2b0] sm:$0xff]  ;;  %v881_v27 = vld [vmem:[%s2555_s4 + $0x3d8] sm:$0xff] }
  0xc0   : > { %v1594_v35 = vpack.c.bf16 %v442_v33, %v441_v34  ;;  %v1690_v32 = vpack.c.bf16 %v844_v31, %v842_v30  ;;  %v847_v33 = vld [vmem:[%s2555_s4 + $0x2c8] sm:$0xff]  ;;  %v849_v34 = vld [vmem:[%s2555_s4 + $0x2d8] sm:$0xff]  ;;  %v878_v28 = vld [vmem:[%s2555_s4 + $0x3c0] sm:$0xff] }
  0xc1   : > { %v880_v30 = vld [vmem:[%s2555_s4 + $0x3d0] sm:$0xff]  ;;  %v883_v31 = vld [vmem:[%s2555_s4 + $0x3e8] sm:$0xff] }
  0xc2   : > { %1595 = vmatpush3.bf16.msra.mxu0 %v1594_v35  ;;  %v1692_v35 = vpack.c.bf16 %v849_v34, %v847_v33  ;;  %v1726_v33 = vpack.c.bf16 %v880_v30, %v878_v28 }
  0xc3   : > { %1669 = vmatprep.subr.bf16.mxu0 %v1668_v47  ;;  %v1700_v47 = vpack.c.bf16 %v857_v46, %v855_v45 }
  0xc5   : > { %1580 = vmatmul.mubr.msk.f32.vlgmr.msra.gmra.mrb[0].mxu0 %vm444_vm2, %v443_v36  ;;  %v846_v36 = vld [vmem:[%s2555_s4 + $0x2c0] sm:$0xff] }
  0xc6   : > { %1671 = vmatpush1.bf16.msra.mxu0 %v1670_v51  ;;  %v859_v51 = vld [vmem:[%s2555_s4 + $0x328] sm:$0xff] }
  0xc7   : > { %1673 = vmatprep.subr.bf16.mxu0 %v1672_v52  ;;  %v861_v52 = vld [vmem:[%s2555_s4 + $0x338] sm:$0xff] }
  0xc8   : > { %v1704_v53 = vpack.c.bf16 %v861_v52, %v859_v51 }
  0xca   : > { %1675 = vmatpush1.bf16.msra.mxu0 %v1674_v57  ;;  %v1706_v57 = vpack.c.bf16 %v860_v55, %v858_v54 }
  0xcb   : > { %1677 = vmatprep.subr.bf16.mxu0 %v1676_v58  ;;  %v865_v58 = vld [vmem:[%s2555_s4 + $0x358] sm:$0xff] }
  0xcc   : > { %v1708_v61 = vpack.c.bf16 %v865_v58, %v863_v56 }
  0xce   : > { %1679 = vmatpush1.bf16.msra.mxu0 %v1678_v63  ;;  %v869_v63 = vld [vmem:[%s2555_s4 + $0x378] sm:$0xff] }
  0xcf   : > { %1681 = vmatprep.subr.bf16.mxu0 %v1680_v3  ;;  %v1710_v3 = vpack.c.bf16 %v864_v60, %v862_v59  ;;  %v1712_v4 = vpack.c.bf16 %v869_v63, %v867_v62  ;;  %v759_v63 = vld [vmem:[%s2555_s4 + $0x8] sm:$0xff] }
  0xd2   : > { %1683 = vmatpush1.bf16.msra.mxu0 %v1682_v7  ;;  %v868_v7 = vld [vmem:[%s2555_s4 + $0x370] sm:$0xff] }
  0xd3   : > { %1685 = vmatprep.subr.bf16.mxu0 %v1684_v23  ;;  %v874_v23 = vld [vmem:[%s2555_s4 + $0x3a0] sm:$0xff] }
  0xd4   : > { %v1722_v25 = vpack.c.bf16 %v876_v24, %v874_v23  ;;  %v760_v23 = vld [vmem:[%s2555_s4 + $0x10] sm:$0xff]  ;;  %v763_v24 = vld [vmem:[%s2555_s4 + $0x28] sm:$0xff] }
  0xd6   : > { %1687 = vmatpush1.bf16.msra.mxu0 %v1686_v26  ;;  %v879_v26 = vld [vmem:[%s2555_s4 + $0x3c8] sm:$0xff] }
  0xd7   : > { %1689 = vmatprep.subr.bf16.mxu0 %v1688_v29  ;;  %v1724_v29 = vpack.c.bf16 %v881_v27, %v879_v26 }
  0xda   : > { %1691 = vmatpush1.bf16.msra.mxu0 %v1690_v32  ;;  %v885_v32 = vld [vmem:[%s2555_s4 + $0x3f8] sm:$0xff] }
  0xdb   : > { %1693 = vmatprep.subr.bf16.mxu0 %v1692_v35  ;;  %v1728_v34 = vpack.c.bf16 %v885_v32, %v883_v31  ;;  %v882_v35 = vld [vmem:[%s2555_s4 + $0x3e0] sm:$0xff] }
  0xdc   : > { %v762_v32 = vld [vmem:[%s2555_s4 + $0x20] sm:$0xff] }
 0x198   : > { %v514_v38 = vpop.f32.mrb[0].mxu0 }
 0x199   : > { %v518_v39 = vmax.f32 %v514_v38, 0.0  ;;  %v1581_v40 = vpop.f32.mrb[1].mxu0  ;;  %v1694_v38 = vpack.c.bf16 %v848_v37, %v846_v36  ;;  %v884_v36 = vld [vmem:[%s2555_s4 + $0x3f0] sm:$0xff] }
 0x19a   : > { %v853_v40 = vld [vmem:[%s2555_s4 + $0x2f8] sm:$0xff]  ;;  %v1730_v37 = vpack.c.bf16 %v884_v36, %v882_v35  ;;  %v1865_v36 = vmov 0.03125  }
 0x19b   : > { %1582 = vmatprep.subr.mxu1 %v518_v39  ;;  %1695 = vmatpush1.bf16.msra.mxu0 %v1694_v38  ;;  %v769_v35 = vld [vmem:[%s2555_s4 + $0x58] sm:$0xff] }
 0x19c   : > { %1583 = vmatpush3.msra.mxu1 %v518_v39  ;;  %v851_v39 = vld [vmem:[%s2555_s4 + $0x2e8] sm:$0xff] }
 0x19d   : > { %1585 = vmatmul.mubr.msk.f32.vlgmr.msra.gmra.mrb[0].mxu1 %vm523_vm3, %v520_v41  ;;  %v1696_v41 = vpack.c.bf16 %v853_v40, %v851_v39 }
 0x19e   : > { %1587 = vmatprep.mubr.msk.f32.mxu1 %vm523_vm3, %v521_v42  ;;  %v850_v42 = vld [vmem:[%s2555_s4 + $0x2e0] sm:$0xff] }
 0x19f   : > { %1697 = vmatprep.subr.bf16.mxu0 %v1696_v41 }
 0x1a1   : > { %1588 = vmatmul.mubr.msk.f32.gmra.mrb[2].mxu1 %vm523_vm3, %v522_v43  ;;  %v852_v43 = vld [vmem:[%s2555_s4 + $0x2f0] sm:$0xff] }
 0x1a2   : > { %733 = vmatprep.mubr.f32.mxu1 %v1864_v17  ;;  %v1698_v44 = vpack.c.bf16 %v852_v43, %v850_v42 }
 0x1a4   : > { %1699 = vmatpush1.bf16.msra.mxu0 %v1698_v44 }
 0x1a5   : > { %1701 = vmatprep.subr.bf16.mxu0 %v1700_v47 }
 0x1a8   : > { %1703 = vmatpush1.bf16.msra.mxu0 %v1702_v50 }
 0x1a9   : > { %1705 = vmatprep.subr.bf16.mxu0 %v1704_v53 }
 0x1ac   : > { %1707 = vmatpush1.bf16.msra.mxu0 %v1706_v57 }
 0x1ad   : > { %1709 = vmatprep.subr.bf16.mxu0 %v1708_v61 }
 0x1b0   : > { %1711 = vmatpush1.bf16.msra.mxu0 %v1710_v3  ;;  %v761_v3 = vld [vmem:[%s2555_s4 + $0x18] sm:$0xff] }
 0x1b1   : > { %1713 = vmatprep.subr.bf16.mxu0 %v1712_v4 }
 0x270   : > { %v1586_v12 = vpop.f32.mrb[0].mxu1 }
 0x271   : > { %v602_v13 = vpop.f32.mrb[1].mxu1  ;;  %v625_v14 = vsel %vm621_vm4, %v1586_v12, 0.0  ;;  %v1714_v12 = vpack.c.bf16 %v868_v7, %v866_v6 }
 0x272   : > { %626 = vadd.xlane.f32.xlu1 %v625_v14  ;;  %v622_v15 = vsel %vm621_vm4, %v602_v13, 0.0  ;;  %v871_v13 = vld [vmem:[%s2555_s4 + $0x388] sm:$0xff]  ;;  %v873_v14 = vld [vmem:[%s2555_s4 + $0x398] sm:$0xff] }
 0x273   : > { %623 = vadd.xlane.f32.xlu0 %v622_v15  ;;  %1715 = vmatpush1.bf16.msra.mxu0 %v1714_v12  ;;  %v1716_v15 = vpack.c.bf16 %v873_v14, %v871_v13 }
 0x274   : > { %v1589_v16 = vpop.f32.mrb[2].mxu1 }
 0x275   : > { %v612_v18 = vpop.f32.mrb[3].mxu1  ;;  %v631_v19 = vsel %vm621_vm4, %v1589_v16, 0.0  ;;  %v870_v16 = vld [vmem:[%s2555_s4 + $0x380] sm:$0xff]  ;;  %1717 = vmatprep.subr.bf16.mxu0 %v1716_v15 }
 0x276   : > { %632 = vadd.xlane.f32.xlu1 %v631_v19  ;;  %v628_v20 = vsel %vm621_vm4, %v612_v18, 0.0  ;;  %v872_v18 = vld [vmem:[%s2555_s4 + $0x390] sm:$0xff] }
 0x277   : > { %629 = vadd.xlane.f32.xlu0 %v628_v20  ;;  %v1718_v19 = vpack.c.bf16 %v872_v18, %v870_v16  ;;  %v875_v20 = vld [vmem:[%s2555_s4 + $0x3a8] sm:$0xff]  ;;  %v1604_v16 = vpack.c.bf16 %v761_v3, %v759_v63  ;;  %v774_v3 = vld [vmem:[%s2555_s4 + $0x80] sm:$0xff] }
 0x278   : > { %v1720_v22 = vpack.c.bf16 %v877_v21, %v875_v20 }
 0x279   : > { %1719 = vmatpush1.bf16.msra.mxu0 %v1718_v19 }
 0x27a   : > { %1721 = vmatprep.subr.bf16.mxu0 %v1720_v22  ;;  %v758_v22 = vld [vmem:[%s2555_s4] sm:$0xff] }
 0x27b   : > { %v1606_v28 = vpack.c.bf16 %v760_v23, %v758_v22  ;;  %v782_v22 = vld [vmem:[%s2555_s4 + $0xc0] sm:$0xff]  ;;  %v784_v23 = vld [vmem:[%s2555_s4 + $0xd0] sm:$0xff] }
 0x27d   : > { %1723 = vmatpush1.bf16.msra.mxu0 %v1722_v25  ;;  %v765_v25 = vld [vmem:[%s2555_s4 + $0x38] sm:$0xff] }
 0x27e   : > { %1725 = vmatprep.subr.bf16.mxu0 %v1724_v29  ;;  %v1608_v31 = vpack.c.bf16 %v765_v25, %v763_v24  ;;  %v787_v24 = vld [vmem:[%s2555_s4 + $0xe8] sm:$0xff]  ;;  %v789_v25 = vld [vmem:[%s2555_s4 + $0xf8] sm:$0xff] }
 0x281   : > { %1727 = vmatpush1.bf16.msra.mxu0 %v1726_v33  ;;  %v764_v33 = vld [vmem:[%s2555_s4 + $0x30] sm:$0xff] }
 0x282   : > { %1729 = vmatprep.subr.bf16.mxu0 %v1728_v34  ;;  %v767_v34 = vld [vmem:[%s2555_s4 + $0x48] sm:$0xff] }
 0x285   : > { %1731 = vmatpush1.bf16.msra.mxu0 %v1730_v37 }
 0x2ff   : > { %v627_v38 = vpop.xlane.xlu1 %626 }
 0x300   : > { %v1522_v39 = vmul.f32 -1.442695, %v627_v38  ;;  %v624_v40 = vpop.xlane.xlu0 %623 }
 0x301   : > { %v1521_v41 = vmul.f32 -1.442695, %v624_v40 }
 0x302   : > { %1770 = vpow2.f32 %v1522_v39  ;;  %v1610_v39 = vpack.c.bf16 %v764_v33, %v762_v32 }
 0x303   : > { %1772 = vpow2.f32 %v1521_v41  ;;  %v633_v42 = vpop.xlane.xlu1 %632 }
 0x304   : > { %v1524_v43 = vmul.f32 -1.442695, %v633_v42  ;;  %v630_v44 = vpop.xlane.xlu0 %629  ;;  %v1612_v42 = vpack.c.bf16 %v769_v35, %v767_v34  ;;  %v790_v34 = vld [vmem:[%s2555_s4 + $0x100] sm:$0xff]  ;;  %v792_v35 = vld [vmem:[%s2555_s4 + $0x110] sm:$0xff] }
 0x305   : > { %v1523_v45 = vmul.f32 -1.442695, %v630_v44  ;;  %v768_v44 = vld [vmem:[%s2555_s4 + $0x50] sm:$0xff] }
 0x306   : > { %1774 = vpow2.f32 %v1524_v43  ;;  %v766_v43 = vld [vmem:[%s2555_s4 + $0x40] sm:$0xff] }
 0x307   : > { %1776 = vpow2.f32 %v1523_v45  ;;  %v771_v45 = vld [vmem:[%s2555_s4 + $0x68] sm:$0xff] }
 0x30c   : > { %v1771_v46 = vpop.eup %1770 }
 0x30d   : > { %v1773_v47 = vpop.eup %1772  ;;  %v647_v48 = vadd.f32 1.0, %v1771_v46  ;;  %v773_v46 = vld [vmem:[%s2555_s4 + $0x78] sm:$0xff] }
 0x30e   : > { %v646_v49 = vadd.f32 1.0, %v1773_v47 }
 0x30f   : > { %1778 = vrcp.f32 %v647_v48 }
 0x310   : > { %v1775_v50 = vpop.eup %1774  ;;  %1780 = vrcp.f32 %v646_v49  ;;  %v1614_v49 = vpack.c.bf16 %v768_v44, %v766_v43  ;;  %v801_v43 = vld [vmem:[%s2555_s4 + $0x158] sm:$0xff] }
 0x311   : > { %v1777_v51 = vpop.eup %1776  ;;  %v649_v52 = vadd.f32 1.0, %v1775_v50 }
 0x312   : > { %v648_v53 = vadd.f32 1.0, %v1777_v51 }
 0x313   : > { %1782 = vrcp.f32 %v649_v52  ;;  %v1616_v52 = vpack.c.bf16 %v773_v46, %v771_v45  ;;  %v798_v46 = vld [vmem:[%s2555_s4 + $0x140] sm:$0xff] }
 0x314   : > { %1784 = vrcp.f32 %v648_v53  ;;  %v770_v53 = vld [vmem:[%s2555_s4 + $0x60] sm:$0xff] }
 0x319   : > { %v2213_v54 = vpop.eup %1778 }
 0x31a   : > { %v2215_v55 = vpop.eup %1780  ;;  %v661_v56 = vmul.f32 %v2213_v54, %v1973_v5  ;;  %v660_v57 = vmul.f32 %v2213_v54, %v1966_v2 }
 0x31b   : > { %v659_v58 = vmul.f32 %v2215_v55, %v1963_v1  ;;  %v658_v59 = vmul.f32 %v2215_v55, %v1960_v0 }
 0x31d   : > { %v2225_v60 = vpop.eup %1782  ;;  %v1596_v61 = vpack.c.bf16 %v661_v56, %v659_v58  ;;  %v1598_v62 = vpack.c.bf16 %v660_v57, %v658_v59 }
 0x31e   : > { %v2233_v4 = vpop.eup %1784  ;;  %v665_v6 = vmul.f32 %v2225_v60, %v1983_v9  ;;  %v664_v7 = vmul.f32 %v2225_v60, %v1980_v8 }
 0x31f   : > { %1597 = vmatprep.subr.bf16.mxu1 %v1596_v61  ;;  %v663_v12 = vmul.f32 %v2233_v4, %v1989_v11  ;;  %v662_v13 = vmul.f32 %v2233_v4, %v1986_v10 }
 0x320   : > { %1599 = vmatpush1.bf16.msra.mxu1 %v1598_v62  ;;  %v750_v14 = vmax.f32 %v661_v56, %v665_v6  ;;  %v741_v15 = vmax.f32 %v660_v57, %v664_v7  ;;  %v772_v56 = vld [vmem:[%s2555_s4 + $0x70] sm:$0xff]  ;;  %v775_v57 = vld [vmem:[%s2555_s4 + $0x88] sm:$0xff] }
 0x321   : > { %v1600_v18 = vpack.c.bf16 %v665_v6, %v663_v12  ;;  %v749_v19 = vmax.f32 %v659_v58, %v663_v12  ;;  %v1602_v20 = vpack.c.bf16 %v664_v7, %v662_v13  ;;  %v740_v21 = vmax.f32 %v658_v59, %v662_v13  ;;  %v777_v58 = vld [vmem:[%s2555_s4 + $0x98] sm:$0xff]  ;;  %v776_v6 = vld [vmem:[%s2555_s4 + $0x90] sm:$0xff]  ;;  %v779_v7 = vld [vmem:[%s2555_s4 + $0xa8] sm:$0xff] }
 0x322   : > { %v1618_v62 = vpack.c.bf16 %v772_v56, %v770_v53  ;;  %v1620_v63 = vpack.c.bf16 %v777_v58, %v775_v57  ;;  %v781_v12 = vld [vmem:[%s2555_s4 + $0xb8] sm:$0xff]  ;;  %v1622_v13 = vpack.c.bf16 %v776_v6, %v774_v3  ;;  %v804_v53 = vld [vmem:[%s2555_s4 + $0x170] sm:$0xff]  ;;  %v807_v56 = vld [vmem:[%s2555_s4 + $0x188] sm:$0xff] }
 0x323   : > { %1601 = vmatprep.subr.bf16.mxu1 %v1600_v18  ;;  %v751_v26 = vmax.f32 %v749_v19, %v750_v14  ;;  %v742_v27 = vmax.f32 %v740_v21, %v741_v15  ;;  %v1624_v14 = vpack.c.bf16 %v781_v12, %v779_v7  ;;  %v778_v15 = vld [vmem:[%s2555_s4 + $0xa0] sm:$0xff]  ;;  %v783_v18 = vld [vmem:[%s2555_s4 + $0xc8] sm:$0xff]  ;;  %v785_v19 = vld [vmem:[%s2555_s4 + $0xd8] sm:$0xff] }
 0x324   : > { %1603 = vmatpush1.bf16.msra.mxu1 %v1602_v20  ;;  %v1628_v21 = vpack.c.bf16 %v785_v19, %v783_v18  ;;  %v809_v57 = vld [vmem:[%s2555_s4 + $0x198] sm:$0xff]  ;;  %v810_v12 = vld [vmem:[%s2555_s4 + $0x1a0] sm:$0xff] }
 0x325   : > { %v752_v29 = vrot.slane %v751_v26, 4  ;;  %v743_v30 = vrot.slane %v742_v27, 4  ;;  %1605 = vmatprep.subr.bf16.mxu1 %v1604_v16  ;;  %v780_v16 = vld [vmem:[%s2555_s4 + $0xb0] sm:$0xff]  ;;  %v813_v3 = vld [vmem:[%s2555_s4 + $0x1b8] sm:$0xff]  ;;  %v814_v19 = vld [vmem:[%s2555_s4 + $0x1c0] sm:$0xff] }
 0x326   : > { %v1626_v20 = vpack.c.bf16 %v780_v16, %v778_v15  ;;  %v817_v15 = vld [vmem:[%s2555_s4 + $0x1d8] sm:$0xff] }
 0x327   : > { %1525 = vmatmul.mubr.msk.f32.vlgmr.msra.gmra.mrb[4].mxu1 %vm444_vm2, %v1865_v36  ;;  %v753_v37 = vmax.f32 %v751_v26, %v752_v29  ;;  %v744_v38 = vmax.f32 %v742_v27, %v743_v30  ;;  %v1630_v26 = vpack.c.bf16 %v784_v23, %v782_v22  ;;  %v1632_v27 = vpack.c.bf16 %v789_v25, %v787_v24  ;;  %v788_v29 = vld [vmem:[%s2555_s4 + $0xf0] sm:$0xff]  ;;  %v791_v30 = vld [vmem:[%s2555_s4 + $0x108] sm:$0xff]  ;;  %v821_v22 = vld [vmem:[%s2555_s4 + $0x1f8] sm:$0xff] }
 0x328   : > { %1607 = vmatpush1.bf16.msra.mxu1 %v1606_v28  ;;  %v786_v28 = vld [vmem:[%s2555_s4 + $0xe0] sm:$0xff]  ;;  %v795_v36 = vld [vmem:[%s2555_s4 + $0x128] sm:$0xff] }
 0x329   : > { %v754_v40 = vrot.slane %v753_v37, 2  ;;  %v745_v41 = vrot.slane %v744_v38, 2  ;;  %1609 = vmatprep.subr.bf16.mxu1 %v1608_v31  ;;  %v793_v31 = vld [vmem:[%s2555_s4 + $0x118] sm:$0xff]  ;;  %v1634_v32 = vpack.c.bf16 %v788_v29, %v786_v28  ;;  %v818_v25 = vld [vmem:[%s2555_s4 + $0x1e0] sm:$0xff]  ;;  %v1732_v28 = vpack.c.bf16 %v1973_v5, %v1963_v1  ;;  %v1239_v5 = vld [vmem:[%s2560_s9 + $0x8] sm:$0xff] }
 0x32a   : > { %v1636_v33 = vpack.c.bf16 %v793_v31, %v791_v30  ;;  %v1123_v29 = vld [vmem:[%s2558_s7] sm:$0xff]  ;;  %v1866_v30 = vmov 0   ;;  %v1273_v1 = vld [vmem:[%s2561_s10 + $0x18] sm:$0xff] }
 0x32b   : > { %v755_v47 = vmax.f32 %v753_v37, %v754_v40  ;;  %v746_v48 = vmax.f32 %v744_v38, %v745_v41  ;;  %v797_v37 = vld [vmem:[%s2555_s4 + $0x138] sm:$0xff]  ;;  %v1638_v38 = vpack.c.bf16 %v792_v35, %v790_v34  ;;  %v794_v40 = vld [vmem:[%s2555_s4 + $0x120] sm:$0xff]  ;;  %v796_v41 = vld [vmem:[%s2555_s4 + $0x130] sm:$0xff]  ;;  %1769 = vset.pattern.permute.xlu1 %v1866_v30  ;;  %1768 = vset.pattern.permute.xlu0 %v1866_v30 }
 0x32c   : > { %1611 = vmatpush1.bf16.msra.mxu1 %v1610_v39  ;;  %v1640_v39 = vpack.c.bf16 %v797_v37, %v795_v36  ;;  %v1642_v44 = vpack.c.bf16 %v796_v41, %v794_v40  ;;  %1126 = vperm.xlu1 %1769, %v1123_v29   ;;  %v1115_v31 = vld [vmem:[%s2557_s6] sm:$0xff]  ;;  %v1241_v34 = vld [vmem:[%s2560_s9 + $0x18] sm:$0xff]  ;;  %v1271_v36 = vld [vmem:[%s2561_s10 + $0x8] sm:$0xff]  ;;  %v1736_v41 = vpack.c.bf16 %v1983_v9, %v1989_v11 }
 0x32d   : > { %v756_v50 = vrot.slane %v755_v47, 1  ;;  %v747_v51 = vrot.slane %v746_v48, 1  ;;  %1613 = vmatprep.subr.bf16.mxu1 %v1612_v42  ;;  %v799_v42 = vld [vmem:[%s2555_s4 + $0x148] sm:$0xff]  ;;  %1118 = vperm.xlu0 %1768, %v1115_v31   ;;  %v1270_v35 = vld [vmem:[%s2561_s10] sm:$0xff]  ;;  %v1272_v37 = vld [vmem:[%s2561_s10 + $0x10] sm:$0xff] }
 0x32e   : > { %v1644_v45 = vpack.c.bf16 %v801_v43, %v799_v42  ;;  %v1738_v42 = vpack.c.bf16 %v1980_v8, %v1986_v10  ;;  %v1040_v43 = vld [vmem:[%s2556_s5] sm:$0xff] }
 0x32f   : > { %v757_v59 = vmax.f32 %v755_v47, %v756_v50  ;;  %v748_v61 = vmax.f32 %v746_v48, %v747_v51  ;;  %v800_v47 = vld [vmem:[%s2555_s4 + $0x150] sm:$0xff]  ;;  %v803_v48 = vld [vmem:[%s2555_s4 + $0x168] sm:$0xff] }
 0x330   : > { %1615 = vmatpush1.bf16.msra.mxu1 %v1614_v49  ;;  %v805_v49 = vld [vmem:[%s2555_s4 + $0x178] sm:$0xff]  ;;  %v1646_v50 = vpack.c.bf16 %v800_v47, %v798_v46 }
 0x331   : > { %1021 = vmatprep.mubr.f32.mxu0 %v757_v59  ;;  %1617 = vmatprep.subr.bf16.mxu1 %v1616_v52  ;;  %v1648_v51 = vpack.c.bf16 %v805_v49, %v803_v48  ;;  %v802_v52 = vld [vmem:[%s2555_s4 + $0x160] sm:$0xff]  ;;  %v1652_v59 = vpack.c.bf16 %v809_v57, %v807_v56 }
 0x332   : > { %1022 = vmatmul.mubr.f32.vlgmr.msra.gmra.mrb[2].mxu0 %v748_v61  ;;  %v1650_v58 = vpack.c.bf16 %v804_v53, %v802_v52  ;;  %v806_v61 = vld [vmem:[%s2555_s4 + $0x180] sm:$0xff]  ;;  %1291 = vperm.xlu0 %1768, %v1273_v1  }
 0x333   : > { %1213 = vmatprep.mubr.f32.mxu0 %v1864_v17 }
 0x334   : > { %1619 = vmatpush1.bf16.msra.mxu1 %v1618_v62  ;;  %v808_v62 = vld [vmem:[%s2555_s4 + $0x190] sm:$0xff] }
 0x335   : > { %1621 = vmatprep.subr.bf16.mxu1 %v1620_v63  ;;  %v811_v63 = vld [vmem:[%s2555_s4 + $0x1a8] sm:$0xff]  ;;  %v1654_v6 = vpack.c.bf16 %v808_v62, %v806_v61  ;;  %v1136_v61 = vld [vmem:[%s2559_s8 + $0x18] sm:$0xff] }
 0x336   : > { %v1656_v7 = vpack.c.bf16 %v813_v3, %v811_v63 }
 0x338   : > { %1623 = vmatpush1.bf16.msra.mxu1 %v1622_v13  ;;  %v812_v13 = vld [vmem:[%s2555_s4 + $0x1b0] sm:$0xff] }
 0x339   : > { %1625 = vmatprep.subr.bf16.mxu1 %v1624_v14  ;;  %v815_v14 = vld [vmem:[%s2555_s4 + $0x1c8] sm:$0xff]  ;;  %v1658_v16 = vpack.c.bf16 %v812_v13, %v810_v12  ;;  %v1135_v13 = vld [vmem:[%s2559_s8 + $0x10] sm:$0xff] }
 0x33a   : > { %v1660_v18 = vpack.c.bf16 %v817_v15, %v815_v14  ;;  %v1391_v15 = vstv %s1541_s21 }
 0x33c   : > { %1627 = vmatpush1.bf16.msra.mxu1 %v1626_v20  ;;  %v816_v20 = vld [vmem:[%s2555_s4 + $0x1d0] sm:$0xff] }
 0x33d   : > { %1629 = vmatprep.subr.bf16.mxu1 %v1628_v21  ;;  %v819_v21 = vld [vmem:[%s2555_s4 + $0x1e8] sm:$0xff]  ;;  %v1662_v23 = vpack.c.bf16 %v816_v20, %v814_v19 }
 0x33e   : > { %v1664_v24 = vpack.c.bf16 %v821_v22, %v819_v21  ;;  %v1393_v21 = vmul.f32 %v2213_v54, %v1391_v15 }
 0x340   : > { %1631 = vmatpush1.bf16.msra.mxu1 %v1630_v26  ;;  %v820_v26 = vld [vmem:[%s2555_s4 + $0x1f0] sm:$0xff] }
 0x341   : > { %1633 = vmatprep.subr.bf16.mxu1 %v1632_v27  ;;  %v1666_v27 = vpack.c.bf16 %v820_v26, %v818_v25 }
 0x344   : > { %1635 = vmatpush1.bf16.msra.mxu1 %v1634_v32  ;;  %v1238_v32 = vld [vmem:[%s2560_s9] sm:$0xff] }
 0x345   : > { %1637 = vmatprep.subr.bf16.mxu1 %v1636_v33  ;;  %1244 = vperm.xlu1 %1769, %v1238_v32   ;;  %v1240_v33 = vld [vmem:[%s2560_s9 + $0x10] sm:$0xff] }
 0x348   : > { %1639 = vmatpush1.bf16.msra.mxu1 %v1638_v38 }
 0x349   : > { %1641 = vmatprep.subr.bf16.mxu1 %v1640_v39  ;;  %1249 = vperm.xlu1 %1769, %v1239_v5   ;;  %v1734_v39 = vpack.c.bf16 %v1966_v2, %v1960_v0 }
 0x34c   : > { %1643 = vmatpush1.bf16.msra.mxu1 %v1642_v44 }
 0x34d   : > { %1645 = vmatprep.subr.bf16.mxu1 %v1644_v45  ;;  %1254 = vperm.xlu1 %1769, %v1240_v33  }
 0x350   : > { %1647 = vmatpush1.bf16.msra.mxu1 %v1646_v50 }
 0x351   : > { %1649 = vmatprep.subr.bf16.mxu1 %v1648_v51  ;;  %1259 = vperm.xlu1 %1769, %v1241_v34  }
 0x354   : > { %1651 = vmatpush1.bf16.msra.mxu1 %v1650_v58 }
 0x355   : > { %1653 = vmatprep.subr.bf16.mxu1 %v1652_v59  ;;  %1276 = vperm.xlu1 %1769, %v1270_v35   ;;  %v1133_v59 = vld [vmem:[%s2559_s8] sm:$0xff] }
 0x358   : > { %1655 = vmatpush1.bf16.msra.mxu1 %v1654_v6  ;;  %v1398_v6 = vlaneseq }
 0x359   : > { %1657 = vmatprep.subr.bf16.mxu1 %v1656_v7  ;;  %1281 = vperm.xlu1 %1769, %v1271_v36   ;;  %v1134_v7 = vld [vmem:[%s2559_s8 + $0x8] sm:$0xff] }
 0x35a   : > { %v1399_v12 = vshrl.u32 %v1398_v6, 7 }
 0x35c   : > { %1659 = vmatpush1.bf16.msra.mxu1 %v1658_v16  ;;  %v1400_v14 = vsub.s32 0, %v1399_v12 }
 0x35d   : > { %1661 = vmatprep.subr.bf16.mxu1 %v1660_v18  ;;  %1286 = vperm.xlu1 %1769, %v1272_v37  }
 0x360   : > { %1663 = vmatpush1.bf16.msra.mxu1 %v1662_v23  ;;  %v1392_v23 = vmul.f32 %v2215_v55, %v1391_v15 }
 0x361   : > { %1665 = vmatprep.subr.bf16.mxu1 %v1664_v24  ;;  %v1395_v24 = vmul.f32 %v2225_v60, %v1391_v15 }
 0x364   : > { %1667 = vmatpush1.bf16.msra.mxu1 %v1666_v27 }
 0x365   : > { %1733 = vmatprep.subr.bf16.mxu1 %v1732_v28 }
 0x3ab   : > { %v1127_v50 = vpop.permute.xlu1 %1126 }
 0x3ac   : > { %v1119_v10 = vpop.permute.xlu0 %1118 }
 0x3c4   : > { %v1245_v5 = vpop.permute.xlu1 %1244 }
 0x3c8   : > { %v1250_v33 = vpop.permute.xlu1 %1249 }
 0x3cc   : > { %v1255_v34 = vpop.permute.xlu1 %1254 }
 0x3d0   : > { %v1260_v35 = vpop.permute.xlu1 %1259 }
 0x3d4   : > { %v1277_v36 = vpop.permute.xlu1 %1276 }
 0x3fa   : > { %v735_v38 = vpop.f32.mrb[4].mxu1 }
 0x3fb   : > { %v737_v40 = vpop.f32.mrb[5].mxu1 }
 0x3fc   : > { %950 = vmatprep.mubr.f32.mxu1 %v737_v40 }
 0x3fd   : > { %951 = vmatmul.mubr.f32.vlgmr.msra.gmra.mrb[6].mxu1 %v735_v38 }
 0x3fe   : > { %1735 = vmatpush1.bf16.msra.mxu1 %v1734_v39  ;;  %1108 = vmatprep.mubr.f32.mxu1 %v1864_v17 }
 0x3ff   : > { %1737 = vmatprep.subr.bf16.mxu1 %v1736_v41 }
 0x402   : > { %1739 = vmatpush1.bf16.msra.mxu1 %v1738_v42 }
 0x405   : > { %1528 = vmatmul.mubr.msk.f32.vlgmr.msra.gmra.mrb[8].mxu1 %vm444_vm2, %v1040_v43  ;;  %v1023_v0 = vpop.f32.mrb[2].mxu0  ;;  %v1292_v43 = vpop.permute.xlu0 %1291 }
 0x406   : > { %v1025_v2 = vpop.f32.mrb[3].mxu0  ;;  %1231 = vmatprep.mubr.f32.mxu1 %v1864_v17 }
 0x4d0   : > { %v952_v9 = vpop.f32.mrb[6].mxu1 }
 0x4d1   : > { %v1024_v11 = vadd.f32 %v1023_v0, %v952_v9  ;;  %v954_v44 = vpop.f32.mrb[7].mxu1 }
 0x4d2   : > { %v1026_v45 = vadd.f32 %v1025_v2, %v954_v44  ;;  %v1282_v44 = vpop.permute.xlu1 %1281 }
 0x4d3   : > { %v1526_v46 = vmul.f32 -1.442695, %v1024_v11 }
 0x4d4   : > { %v1527_v8 = vmul.f32 -1.442695, %v1026_v45 }
 0x4d5   : > { %1786 = vpow2.f32 %v1526_v46 }
 0x4d6   : > { %1788 = vpow2.f32 %v1527_v8 }
 0x4d8   : > { %v1110_v47 = vpop.f32.mrb[8].mxu1 }
 0x4d9   : > { %v1121_v48 = vmul.f32 %v1119_v10, %v1110_v47  ;;  %v1112_v49 = vpop.f32.mrb[9].mxu1 }
 0x4da   : > { %v1122_v51 = vmul.f32 %v1119_v10, %v1112_v49 }
 0x4db   : > { %v1129_v52 = vadd.f32 %v1127_v50, %v1121_v48 }
 0x4dc   : > { %v1130_v53 = vadd.f32 %v1127_v50, %v1122_v51 }
 0x4dd   : > { %v1131_v58 = vmax.f32 %v1129_v52, 0.0 }
 0x4de   : > { %v1132_v56 = vmax.f32 %v1130_v53, 0.0 }
 0x4df   : > { %v1787_v57 = vpop.eup %1786 }
 0x4e0   : > { %v1789_v62 = vpop.eup %1788  ;;  %v1034_v63 = vadd.f32 1.0, %v1787_v57  ;;  %1149 = vmatprep.subr.mxu0 %v1132_v56  ;;  %1740 = vmatprep.subr.mxu1 %v1132_v56 }
 0x4e1   : > { %v1035_v3 = vadd.f32 1.0, %v1789_v62  ;;  %1150 = vmatpush1.msra.mxu0 %v1131_v58  ;;  %1741 = vmatpush1.msra.mxu1 %v1131_v58  ;;  %v1287_v62 = vpop.permute.xlu1 %1286 }
 0x4e2   : > { %1790 = vrcp.f32 %v1034_v63  ;;  %1529 = vmatmul.mubr.msk.f32.vlgmr.msra.gmra.mrb[4].mxu0 %vm523_vm3, %v1133_v59  ;;  %1532 = vmatmul.mubr.msk.f32.vlgmr.msra.gmra.mrb[10].mxu1 %vm523_vm3, %v1136_v61 }
 0x4e3   : > { %1792 = vrcp.f32 %v1035_v3  ;;  %1219 = vmatprep.mubr.f32.mxu0 %v1864_v17 }
 0x4e6   : > { %1530 = vmatmul.mubr.msk.f32.gmra.mrb[6].mxu0 %vm523_vm3, %v1134_v7 }
 0x4e7   : > { %1225 = vmatprep.mubr.f32.mxu0 %v1864_v17  ;;  %v1394_v17 = vmul.f32 %v2233_v4, %v1391_v15 }
 0x4ea   : > { %1531 = vmatmul.mubr.msk.f32.gmra.mrb[8].mxu0 %vm523_vm3, %v1135_v13 }
 0x4ec   : > { %v1791_v16 = vpop.eup %1790 }
 0x4ed   : > { %v1793_v18 = vpop.eup %1792  ;;  %v1555_v19 = vadd.f32 -1.0, %v1791_v16 }
 0x4ee   : > { %v1556_v20 = vadd.f32 -1.0, %v1793_v18 }
 0x4ef   : > { %v1401_v22 = vrot.slane %v1555_v19, %v1400_v14 }
 0x4f0   : > { %v1405_v25 = vrot.slane %v1556_v20, %v1400_v14 }
 0x4f1   : > { %v2497_v26 = vmul.f32 %v1401_v22, %v1392_v23  ;;  %v2499_v27 = vmul.f32 %v1401_v22, %v1395_v24  ;;  %v2501_v28 = vmul.f32 %v1401_v22, %v1393_v21  ;;  %v2503_v29 = vmul.f32 %v1401_v22, %v1394_v17 }
 0x4f2   : > { %v2505_v30 = vmul.f32 %v1405_v25, %v1392_v23  ;;  %v2507_v31 = vmul.f32 %v1405_v25, %v1395_v24  ;;  %v2509_v32 = vmul.f32 %v1405_v25, %v1393_v21  ;;  %v2511_v1 = vmul.f32 %v1405_v25, %v1394_v17 }
 0x5b5   : > { %v1215_v37 = vpop.f32.mrb[4].mxu0  ;;  %v1233_v38 = vpop.f32.mrb[10].mxu1 }
 0x5b6   : > { %v1262_v39 = vmul.f32 %v1245_v5, %v1215_v37  ;;  %v1268_v40 = vmul.f32 %v1260_v35, %v1233_v38  ;;  %v1217_v41 = vpop.f32.mrb[5].mxu0  ;;  %v1235_v42 = vpop.f32.mrb[11].mxu1 }
 0x5b7   : > { %v1263_v0 = vmul.f32 %v1245_v5, %v1217_v41  ;;  %v1269_v2 = vmul.f32 %v1260_v35, %v1235_v42  ;;  %v1357_v35 = vstv %s1350_s24  ;;  %v1374_v42 = vstv %s1542_s26 }
 0x5b8   : > { %v1294_v9 = vadd.f32 %v1277_v36, %v1262_v39  ;;  %v1300_v11 = vadd.f32 %v1292_v43, %v1268_v40  ;;  %v1544_v39 = vadd.f32 -1.0, %v2213_v54 }
 0x5b9   : > { %v1295_v45 = vadd.f32 %v1277_v36, %v1263_v0  ;;  %v1301_v46 = vadd.f32 %v1292_v43, %v1269_v2  ;;  %v1221_v8 = vpop.f32.mrb[6].mxu0  ;;  %v1546_v36 = vadd.f32 -1.0, %v2225_v60  ;;  %v1545_v60 = vadd.f32 -1.0, %v2233_v4 }
 0x5ba   : > { %v1533_v10 = vmul.f32 -1.442695, %v1294_v9  ;;  %v1539_v47 = vmul.f32 -1.442695, %v1300_v11  ;;  %v1264_v48 = vmul.f32 %v1250_v33, %v1221_v8  ;;  %v1223_v49 = vpop.f32.mrb[7].mxu0 }
 0x5bb   : > { %v1534_v50 = vmul.f32 -1.442695, %v1295_v45  ;;  %v1540_v51 = vmul.f32 -1.442695, %v1301_v46  ;;  %v1265_v52 = vmul.f32 %v1250_v33, %v1223_v49  ;;  %v1543_v33 = vadd.f32 -1.0, %v2215_v55 }
 0x5bc   : > { %1794 = vpow2.f32 %v1533_v10  ;;  %v1296_v53 = vadd.f32 %v1282_v44, %v1264_v48  ;;  %v1361_v43 = vmul.f32 %v1546_v36, %v1357_v35  ;;  %v1359_v55 = vmul.f32 %v1544_v39, %v1357_v35 }
 0x5bd   : > { %1796 = vpow2.f32 %v1539_v47  ;;  %v1297_v56 = vadd.f32 %v1282_v44, %v1265_v52  ;;  %v1227_v57 = vpop.f32.mrb[8].mxu0  ;;  %v1358_v40 = vmul.f32 %v1543_v33, %v1357_v35  ;;  %v1360_v4 = vmul.f32 %v1545_v60, %v1357_v35 }
 0x5be   : > { %1798 = vpow2.f32 %v1534_v50  ;;  %v1535_v58 = vmul.f32 -1.442695, %v1296_v53  ;;  %v1266_v59 = vmul.f32 %v1255_v34, %v1227_v57  ;;  %v1229_v61 = vpop.f32.mrb[9].mxu0  ;;  %v1365_v47 = vadd.f32 1.0, %v1361_v43  ;;  %v1833_v43 = vld [vmem:[%s1957_s28 + $0x28] sm:$0xff] }
 0x5bf   : > { %1800 = vpow2.f32 %v1540_v51  ;;  %v1536_v63 = vmul.f32 -1.442695, %v1297_v56  ;;  %v1267_v3 = vmul.f32 %v1255_v34, %v1229_v61  ;;  %v1362_v45 = vadd.f32 1.0, %v1358_v40 }
 0x5c0   : > { %1802 = vpow2.f32 %v1535_v58  ;;  %v1298_v6 = vadd.f32 %v1287_v62, %v1266_v59  ;;  %v1363_v57 = vadd.f32 1.0, %v1359_v55 }
 0x5c1   : > { %1804 = vpow2.f32 %v1536_v63  ;;  %v1299_v7 = vadd.f32 %v1287_v62, %v1267_v3 }
 0x5c2   : > { %v1537_v12 = vmul.f32 -1.442695, %v1298_v6 }
 0x5c3   : > { %v1538_v13 = vmul.f32 -1.442695, %v1299_v7 }
 0x5c4   : > { %1806 = vpow2.f32 %v1537_v12 }
 0x5c5   : > { %1808 = vpow2.f32 %v1538_v13  ;;  %v1826_v13 = vld [vmem:[%s1957_s28] sm:$0xff] }
 0x5c6   : > { %v1795_v14 = vpop.eup %1794 }
 0x5c7   : > { %v1797_v15 = vpop.eup %1796  ;;  %v1326_v16 = vadd.f32 1.0, %v1795_v14 }
 0x5c8   : > { %v1799_v18 = vpop.eup %1798  ;;  %v1332_v19 = vadd.f32 1.0, %v1797_v15 }
 0x5c9   : > { %v1801_v20 = vpop.eup %1800  ;;  %1810 = vrcp.f32 %v1326_v16  ;;  %v1327_v21 = vadd.f32 1.0, %v1799_v18  ;;  %v1827_v18 = vld [vmem:[%s1957_s28 + $0x30] sm:$0xff] }
 0x5ca   : > { %v1803_v22 = vpop.eup %1802  ;;  %1812 = vrcp.f32 %v1332_v19  ;;  %v1333_v23 = vadd.f32 1.0, %v1801_v20 }
 0x5cb   : > { %v1805_v24 = vpop.eup %1804  ;;  %1814 = vrcp.f32 %v1327_v21  ;;  %v1328_v17 = vadd.f32 1.0, %v1803_v22 }
 0x5cc   : > { %1816 = vrcp.f32 %v1333_v23  ;;  %v1329_v25 = vadd.f32 1.0, %v1805_v24 }
 0x5cd   : > { %1818 = vrcp.f32 %v1328_v17  ;;  %v1364_v17 = vadd.f32 1.0, %v1360_v4 }
 0x5ce   : > { %v1807_v5 = vpop.eup %1806  ;;  %1820 = vrcp.f32 %v1329_v25  ;;  %v1829_v25 = vld [vmem:[%s1957_s28 + $0x38] sm:$0xff] }
 0x5cf   : > { %v1809_v34 = vpop.eup %1808  ;;  %v1330_v37 = vadd.f32 1.0, %v1807_v5 }
 0x5d0   : > { %v1331_v38 = vadd.f32 1.0, %v1809_v34  ;;  %v1830_v34 = vld [vmem:[%s1957_s28 + $0x10] sm:$0xff] }
 0x5d1   : > { %1822 = vrcp.f32 %v1330_v37 }
 0x5d2   : > { %1824 = vrcp.f32 %v1331_v38 }
 0x5d3   : > { %v1811_v41 = vpop.eup %1810 }
 0x5d4   : > { %v1813_v0 = vpop.eup %1812  ;;  %v1547_v2 = vadd.f32 -1.0, %v1811_v41  ;;  %v1832_v41 = vld [vmem:[%s1957_s28 + $0x20] sm:$0xff] }
 0x5d5   : > { %v1815_v9 = vpop.eup %1814  ;;  %v1553_v11 = vadd.f32 -1.0, %v1813_v0 }
 0x5d6   : > { %v1817_v44 = vpop.eup %1816  ;;  %v1375_v46 = vmul.f32 %v1547_v2, %v1374_v42  ;;  %v1548_v8 = vadd.f32 -1.0, %v1815_v9 }
 0x5d7   : > { %v1819_v10 = vpop.eup %1818  ;;  %v1381_v54 = vmul.f32 %v1553_v11, %v1374_v42  ;;  %v1554_v48 = vadd.f32 -1.0, %v1817_v44 }
 0x5d8   : > { %v1821_v49 = vpop.eup %1820  ;;  %v1383_v50 = vadd.f32 %v1375_v46, %v1362_v45  ;;  %v1376_v51 = vmul.f32 %v1548_v8, %v1374_v42  ;;  %v1549_v52 = vadd.f32 -1.0, %v1819_v10 }
 0x5d9   : > { %v1389_v53 = vadd.f32 %v1381_v54, %v1365_v47  ;;  %v1382_v56 = vmul.f32 %v1554_v48, %v1374_v42  ;;  %v1550_v58 = vadd.f32 -1.0, %v1821_v49 }
 0x5da   : > { %v1414_v59 = vadd.f32 %v2497_v26, %v1383_v50  ;;  %v1384_v61 = vadd.f32 %v1376_v51, %v1362_v45  ;;  %v1377_v62 = vmul.f32 %v1549_v52, %v1374_v42 }
 0x5db   : > { %v1823_v63 = vpop.eup %1822  ;;  %v1420_v3 = vadd.f32 %v2499_v27, %v1389_v53  ;;  %v1390_v6 = vadd.f32 %v1382_v56, %v1365_v47  ;;  %v1378_v7 = vmul.f32 %v1550_v58, %v1374_v42  ;;  %v1828_v27 = vld [vmem:[%s1957_s28 + $0x8] sm:$0xff] }
 0x5dc   : > { %v1825_v12 = vpop.eup %1824  ;;  %v1422_v26 = vmul.f32 %v1826_v13, %v1414_v59  ;;  %v1415_v14 = vadd.f32 %v2505_v30, %v1384_v61  ;;  %v1385_v15 = vadd.f32 %v1377_v62, %v1363_v57  ;;  %v1551_v16 = vadd.f32 -1.0, %v1823_v63 }
 0x5dd   : > { %v1428_v19 = vmul.f32 %v1827_v18, %v1420_v3  ;;  %v1421_v20 = vadd.f32 %v2507_v31, %v1390_v6  ;;  %v1386_v21 = vadd.f32 %v1378_v7, %v1363_v57  ;;  %v1552_v22 = vadd.f32 -1.0, %v1825_v12 }
 0x5de   : > { %1430 = vst [vmem:[%s2523_s30] sm:$0xff] %v1422_v26  ;;  %v1423_v23 = vmul.f32 %v1828_v27, %v1415_v14  ;;  %v1416_v24 = vadd.f32 %v2501_v28, %v1385_v15  ;;  %v1379_v30 = vmul.f32 %v1551_v16, %v1374_v42  ;;  %v1831_v28 = vld [vmem:[%s1957_s28 + $0x18] sm:$0xff] }
 0x5df   : > { %1436 = vst [vmem:[%s2523_s30 + $0x30] sm:$0xff] %v1428_v19  ;;  %v1429_v5 = vmul.f32 %v1829_v25, %v1421_v20  ;;  %v1417_v33 = vadd.f32 %v2509_v32, %v1386_v21  ;;  %v1380_v31 = vmul.f32 %v1552_v22, %v1374_v42 }
 0x5e0   : > { %1431 = vst [vmem:[%s2523_s30 + $0x8] sm:$0xff] %v1423_v23  ;;  %v1424_v35 = vmul.f32 %v1830_v34, %v1416_v24  ;;  %v1387_v36 = vadd.f32 %v1379_v30, %v1364_v17 }
 0x5e1   : > { %1437 = vst [vmem:[%s2523_s30 + $0x38] sm:$0xff] %v1429_v5  ;;  %v1425_v37 = vmul.f32 %v1831_v28, %v1417_v33  ;;  %v1388_v38 = vadd.f32 %v1380_v31, %v1364_v17 }
 0x5e2   : > { %1432 = vst [vmem:[%s2523_s30 + $0x10] sm:$0xff] %v1424_v35  ;;  %v1418_v39 = vadd.f32 %v2503_v29, %v1387_v36 }
 0x5e3   : > { %1433 = vst [vmem:[%s2523_s30 + $0x18] sm:$0xff] %v1425_v37  ;;  %v1419_v40 = vadd.f32 %v2511_v1, %v1388_v38 }
 0x5e4   : > { %v1426_v32 = vmul.f32 %v1832_v41, %v1418_v39 }
 0x5e5   : > { %v1427_v42 = vmul.f32 %v1833_v43, %v1419_v40 }
 0x5e6   : > { %1434 = vst [vmem:[%s2523_s30 + $0x20] sm:$0xff] %v1426_v32 }
 0x5e7   : > { %1435 = vst [vmem:[%s2523_s30 + $0x28] sm:$0xff] %v1427_v42 }
 0x5e8 PF: > { %s22_s17 = sadd.s32 1, %s1859_s17  }
 0x5e9   : > { %p19_p1 = scmp.ge.s32.totalorder %s22_s17, 4  }
 0x5eb   :  { %21 = sbr.rel (!%p19_p1) target bundleno = 1 (0x1), region = 99 }
 0x5f2   :  { %1459 = vsyncpa [#allocation3], 1 }
 0x5f3   :  { %1461 = vsyncpa [#allocation3 + $0x1], 1 }

</bundles_post_ra>
